<compile_context>
chip_gen: v7x
topology: tpu7x:2x2x1
jax: 0.10.0
libtpu: 0.0.40
codegen_flags: <defaults>
</compile_context>

<pallas_src>
import functools

import jax
import jax.numpy as jnp
from jax import lax
from jax.experimental import pallas as pl
from jax.experimental.pallas import tpu as pltpu

_BN_EPS = 1e-5
_DEFUZZY_EPS = 1e-10


def _fnn_kernel(x_ref, mem_mat_ref, mem_bias_ref, mask_ref, scale_ref, shift_ref,
                w_ref, b_ref, o_ref, m_ref):
    """One batch tile: x_ref [TB, K] -> o_ref [TB, L]."""
    K = x_ref.shape[1]
    J = b_ref.shape[0]

    x = x_ref[...]                                            # [TB, K] f32

    # ---- Gaussian membership, reduced over features: one MXU matmul ----------
    # -(x-c)^2/(2 s^2) = -(x*x)*(1/(2 s^2)) + x*(c/s^2) - c^2/(2 s^2)
    # TODO(synk): optionally cast matmul operands to bf16 on v6e/v7x (kept f32 to
    # preserve the module's f32 numerics; logits feed exp).
    xcat = jnp.concatenate([x * x, x], axis=1)                # [TB, 2K]
    logits = (jnp.dot(xcat, mem_mat_ref[...],
                      preferred_element_type=jnp.float32)
              + mem_bias_ref[...])                            # [TB, J] (ampli folded in)
    raw = jnp.exp(logits) * mask_ref[...]                     # rule masking

    # ---- defuzzy='norm': EUP approx reciprocal + one Newton refinement -------
    denom = jnp.sum(raw, axis=-1, keepdims=True) + _DEFUZZY_EPS
    inv = pl.reciprocal(denom, approx=True)
    inv = inv * (2.0 - denom * inv)                           # restore f32 accuracy
    frs = raw * inv                                           # [TB, J]

    # ---- BatchNorm folded to a per-feature affine (stats computed in wrapper) -
    xb = x * scale_ref[...] + shift_ref[...]                  # [TB, K]

    # ---- consequents + combination: single contraction over (rule, feature) ---
    # m[b, j*K + k] = frs[b, j] * xb[b, k] ;  out = m @ W_flat + frs @ bias
    # Each slice is stored to VMEM scratch immediately to keep vreg live ranges small.
    for j in range(J):
        m_ref[:, j * K:(j + 1) * K] = frs[:, j:j + 1] * xb
    o_ref[...] = (jnp.dot(m_ref[...], w_ref[...],
                          preferred_element_type=jnp.float32)
                  + jnp.dot(frs, b_ref[...],
                            preferred_element_type=jnp.float32))


def _prepare_params(centers, sigmas, rule_masks, weights, biases, ampli):
    """x-independent parameter preprocessing (hoisted out of the kernel)."""
    centers = jnp.asarray(centers, jnp.float32)               # [K, J]
    sigmas = jnp.asarray(sigmas, jnp.float32)                 # [K, J]
    weights = jnp.asarray(weights, jnp.float32)               # [J, K, L]
    J, K, L = weights.shape

    inv2s2 = 1.0 / (2.0 * sigmas * sigmas)                               # 1/(2 s^2)
    mem_mat = jnp.concatenate([-inv2s2, 2.0 * centers * inv2s2], axis=0)  # [2K, J]
    mem_bias = ampli - jnp.sum(centers * centers * inv2s2,
                               axis=0, keepdims=True)                     # [1, J]
    mask = jnp.asarray(rule_masks, jnp.float32).reshape(1, J)
    w_flat = weights.reshape(J * K, L)                                    # row j*K+k
    b_flat = jnp.asarray(biases, jnp.float32).reshape(J, L)
    return mem_mat, mem_bias, mask, w_flat, b_flat


def _fuzzy_nn_pallas(x, mem_mat, mem_bias, mask, scale, shift, w_flat, b_flat,
                     *, batch_tile):
    B, K = x.shape
    twoK, J = mem_mat.shape
    JK, L = w_flat.shape

    if batch_tile >= B:
        tb = B
    else:
        tb = max(8, (batch_tile // 8) * 8)                    # sublane multiple
    grid = (pl.cdiv(B, tb),)

    def full(shape):                                          # whole-array parameter spec
        return pl.BlockSpec(shape, lambda i: (0, 0))

    # NOTE: output last dim L is tiny (masked stores); packing many independent
    # problems along the class axis would make it lane-dense, but that changes the
    # module's I/O contract, so it is left as-is.
    return pl.pallas_call(
        _fnn_kernel,
        out_shape=jax.ShapeDtypeStruct((B, L), jnp.float32),
        grid=grid,
        in_specs=[pl.BlockSpec((tb, K), lambda i: (i, 0)),    # x: batch-tiled
                  full((twoK, J)),                            # membership matrix
                  full((1, J)),                               # membership offset (+ampli)
                  full((1, J)),                               # rule masks
                  full((1, K)),                               # BN scale
                  full((1, K)),                               # BN shift
                  full((JK, L)),                              # flattened consequent weights
                  full((J, L))],                              # consequent biases
        out_specs=pl.BlockSpec((tb, L), lambda i: (i, 0)),
        scratch_shapes=[pltpu.VMEM((tb, JK), jnp.float32)],   # fused (rule,feature) operand
        compiler_params=pltpu.CompilerParams(
            dimension_semantics=("parallel",)),
    )(x, mem_mat, mem_bias, mask, scale, shift, w_flat, b_flat)


@functools.partial(jax.jit, static_argnames=("ampli", "batch_tile"))
def fuzzy_nn_forward(x, centers, sigmas, rule_masks, weights, biases, gamma, beta,
                     *, ampli: float = 0.0, batch_tile: int = 256):
    """Training-mode forward of FuzzyNeuralNework (defuzzy='norm', ravel_out=False)."""
    x = jnp.asarray(x, jnp.float32)
    mem_mat, mem_bias, mask, w_flat, b_flat = _prepare_params(
        centers, sigmas, rule_masks, weights, biases, float(ampli))

    # BatchNorm1d (training mode): full-batch statistics, biased variance, folded
    # into a per-feature affine so the tiled kernel sees only scale/shift.
    mu = jnp.mean(x, axis=0, keepdims=True)
    var = jnp.mean((x - mu) * (x - mu), axis=0, keepdims=True)
    scale = jnp.asarray(gamma, jnp.float32).reshape(1, -1) * lax.rsqrt(var + _BN_EPS)
    shift = jnp.asarray(beta, jnp.float32).reshape(1, -1) - mu * scale

    return _fuzzy_nn_pallas(x, mem_mat, mem_bias, mask, scale, shift,
                            w_flat, b_flat, batch_tile=batch_tile)


def fuzzy_nn_reference(x, centers, sigmas, rule_masks, weights, biases, gamma, beta,
                       ampli: float = 0.0):
    """Pure-JAX reference mirroring the PyTorch forward (training-mode BN)."""
    raw = jnp.exp(jnp.sum(-(x[:, :, None] - centers[None]) ** 2
                          / (2.0 * sigmas[None] ** 2), axis=1) + ampli)
    raw = raw * rule_masks.reshape(1, -1)
    frs = raw / (jnp.sum(raw, axis=-1, keepdims=True) + 1e-10)
    mu = jnp.mean(x, axis=0, keepdims=True)
    var = jnp.mean((x - mu) ** 2, axis=0, keepdims=True)
    xb = (x - mu) / jnp.sqrt(var + _BN_EPS) * gamma.reshape(1, -1) + beta.reshape(1, -1)
    cons = jnp.einsum('bk,jkl->bjl', xb, weights) + biases.reshape(1, weights.shape[0], -1)
    return jnp.sum(cons * frs[:, :, None], axis=1)


if __name__ == "__main__":
    B, IN_DIM, N_RULES, N_CLASSES = 64, 16, 8, 4
    AMPLI = 0.0

    key = jax.random.PRNGKey(0)
    kx, kc, ks, kw, kb, kg, kbeta = jax.random.split(key, 7)

    # Deterministic synthetic parameters (shapes match the module's __init__).
    x = jax.random.normal(kx, (B, IN_DIM), jnp.float32)
    centers = jax.random.normal(kc, (IN_DIM, N_RULES), jnp.float32)              # init_centers
    sigmas = jax.random.uniform(ks, (IN_DIM, N_RULES), jnp.float32, 0.5, 1.5)    # init_sigmas
    weights = (jax.random.normal(kw, (N_RULES, IN_DIM, N_CLASSES), jnp.float32)
               / jnp.sqrt(jnp.float32(IN_DIM)))                                  # normal_(std=1/sqrt(in_dim))
    biases = 0.1 * jax.random.normal(kb, (1, N_RULES, N_CLASSES), jnp.float32)   # [1, J, L]
    gamma = 1.0 + 0.1 * jax.random.normal(kg, (1, IN_DIM), jnp.float32)          # bn1.weight
    beta = 0.1 * jax.random.normal(kbeta, (1, IN_DIM), jnp.float32)              # bn1.bias
    rule_masks = jnp.ones((N_RULES,), jnp.float32).at[-1].set(0.0)               # exercise masking

    out = fuzzy_nn_forward(x, centers, sigmas, rule_masks, weights, biases,
                           gamma, beta, ampli=AMPLI, batch_tile=32)              # grid = (2,)
    out = jax.block_until_ready(out)

    ref = fuzzy_nn_reference(x, centers, sigmas, rule_masks, weights, biases,
                             gamma, beta, ampli=AMPLI)
    max_err = jnp.max(jnp.abs(out - ref))
    if not jnp.allclose(out, ref, rtol=2e-3, atol=1e-3):
        raise AssertionError(f"kernel/reference mismatch: max abs err = {max_err}")
    print("KERNEL_OK")
</pallas_src>

<mosaic_0001>
module attributes {stable_mosaic.version = 11 : i64} {
  func.func @_fnn_kernel(%arg0: i32, %arg1: memref<32x16xf32, #tpu.memory_space<vmem>>, %arg2: memref<32x8xf32, #tpu.memory_space<vmem>>, %arg3: memref<1x8xf32, #tpu.memory_space<vmem>>, %arg4: memref<1x8xf32, #tpu.memory_space<vmem>>, %arg5: memref<1x16xf32, #tpu.memory_space<vmem>>, %arg6: memref<1x16xf32, #tpu.memory_space<vmem>>, %arg7: memref<128x4xf32, #tpu.memory_space<vmem>>, %arg8: memref<8x4xf32, #tpu.memory_space<vmem>>, %arg9: memref<32x4xf32, #tpu.memory_space<vmem>>, %arg10: memref<32x128xf32, #tpu.memory_space<vmem>>) attributes {dimension_semantics = [#tpu.dimension_semantics<parallel>], iteration_bounds = array<i64: 2>, scalar_prefetch = 0 : i64, scratch_operands = 1 : i64, tpu.core_type = #tpu.core_type<tc>, window_params = [{transform_indices = @transform_0, window_bounds = array<i64: 32, 16>}, {pipeline_mode = #tpu.pipeline_mode<synchronous>, transform_indices = @transform_1, window_bounds = array<i64: 32, 8>}, {pipeline_mode = #tpu.pipeline_mode<synchronous>, transform_indices = @transform_2, window_bounds = array<i64: 1, 8>}, {pipeline_mode = #tpu.pipeline_mode<synchronous>, transform_indices = @transform_3, window_bounds = array<i64: 1, 8>}, {pipeline_mode = #tpu.pipeline_mode<synchronous>, transform_indices = @transform_4, window_bounds = array<i64: 1, 16>}, {pipeline_mode = #tpu.pipeline_mode<synchronous>, transform_indices = @transform_5, window_bounds = array<i64: 1, 16>}, {pipeline_mode = #tpu.pipeline_mode<synchronous>, transform_indices = @transform_6, window_bounds = array<i64: 128, 4>}, {pipeline_mode = #tpu.pipeline_mode<synchronous>, transform_indices = @transform_7, window_bounds = array<i64: 8, 4>}, {transform_indices = @transform_8, window_bounds = array<i64: 32, 4>}]} {
    %c0 = arith.constant 0 : index
    %c0_0 = arith.constant 0 : index
    %0 = vector.load %arg1[%c0, %c0_0] : memref<32x16xf32, #tpu.memory_space<vmem>>, vector<32x16xf32>
    %1 = arith.mulf %0, %0 : vector<32x16xf32>
    %2 = tpu.concatenate %1, %0 in 1 : vector<32x16xf32>, vector<32x16xf32> -> vector<32x32xf32>
    %c0_1 = arith.constant 0 : index
    %c0_2 = arith.constant 0 : index
    %3 = vector.load %arg2[%c0_1, %c0_2] : memref<32x8xf32, #tpu.memory_space<vmem>>, vector<32x8xf32>
    %cst = arith.constant dense<0.000000e+00> : vector<32x8xf32>
    %4 = tpu.matmul %2, %3, %cst {dimension_numbers = #tpu.dot_dimension_numbers<[1], [0], [0], [1], [0, 0, 1, 1], [], []>} : vector<32x32xf32>, vector<32x8xf32>, vector<32x8xf32> -> vector<32x8xf32>
    %c0_3 = arith.constant 0 : index
    %c0_4 = arith.constant 0 : index
    %5 = vector.load %arg3[%c0_3, %c0_4] : memref<1x8xf32, #tpu.memory_space<vmem>>, vector<1x8xf32>
    %6 = vector.broadcast %5 : vector<1x8xf32> to vector<32x8xf32>
    %7 = arith.addf %4, %6 : vector<32x8xf32>
    %8 = math.exp %7 : vector<32x8xf32>
    %c0_5 = arith.constant 0 : index
    %c0_6 = arith.constant 0 : index
    %9 = vector.load %arg4[%c0_5, %c0_6] : memref<1x8xf32, #tpu.memory_space<vmem>>, vector<1x8xf32>
    %10 = vector.broadcast %9 : vector<1x8xf32> to vector<32x8xf32>
    %11 = arith.mulf %8, %10 : vector<32x8xf32>
    %cst_7 = arith.constant dense<0.000000e+00> : vector<32xf32>
    %12 = vector.multi_reduction <add>, %11, %cst_7 [1] : vector<32x8xf32> to vector<32xf32>
    %13 = vector.shape_cast %12 : vector<32xf32> to vector<32x1xf32>
    %cst_8 = arith.constant 1.000000e-10 : f32
    %14 = vector.broadcast %cst_8 : f32 to vector<32x1xf32>
    %15 = arith.addf %13, %14 : vector<32x1xf32>
    %16 = tpu.reciprocal %15 {approx = true} : vector<32x1xf32> -> vector<32x1xf32>
    %17 = arith.mulf %15, %16 : vector<32x1xf32>
    %cst_9 = arith.constant 2.000000e+00 : f32
    %18 = vector.broadcast %cst_9 : f32 to vector<32x1xf32>
    %19 = arith.subf %18, %17 : vector<32x1xf32>
    %20 = arith.mulf %16, %19 : vector<32x1xf32>
    %21 = vector.broadcast %20 : vector<32x1xf32> to vector<32x8xf32>
    %22 = arith.mulf %11, %21 : vector<32x8xf32>
    %c0_10 = arith.constant 0 : index
    %c0_11 = arith.constant 0 : index
    %23 = vector.load %arg5[%c0_10, %c0_11] : memref<1x16xf32, #tpu.memory_space<vmem>>, vector<1x16xf32>
    %24 = vector.broadcast %23 : vector<1x16xf32> to vector<32x16xf32>
    %25 = arith.mulf %0, %24 : vector<32x16xf32>
    %c0_12 = arith.constant 0 : index
    %c0_13 = arith.constant 0 : index
    %26 = vector.load %arg6[%c0_12, %c0_13] : memref<1x16xf32, #tpu.memory_space<vmem>>, vector<1x16xf32>
    %27 = vector.broadcast %26 : vector<1x16xf32> to vector<32x16xf32>
    %28 = arith.addf %25, %27 : vector<32x16xf32>
    %29 = vector.extract_strided_slice %22 {offsets = [0, 0], sizes = [32, 1], strides = [1, 1]} : vector<32x8xf32> to vector<32x1xf32>
    %30 = vector.broadcast %29 : vector<32x1xf32> to vector<32x16xf32>
    %31 = arith.mulf %30, %28 : vector<32x16xf32>
    %c0_14 = arith.constant 0 : index
    %c0_15 = arith.constant 0 : index
    %32 = vector.load %arg10[%c0_14, %c0_15] : memref<32x128xf32, #tpu.memory_space<vmem>>, vector<32x16xf32>
    tpu.vector_store %arg10[%c0_14, %c0_15], %31 {strides = array<i32>} : memref<32x128xf32, #tpu.memory_space<vmem>>, vector<32x16xf32>,
    %33 = vector.extract_strided_slice %22 {offsets = [0, 1], sizes = [32, 1], strides = [1, 1]} : vector<32x8xf32> to vector<32x1xf32>
    %34 = vector.broadcast %33 : vector<32x1xf32> to vector<32x16xf32>
    %35 = arith.mulf %34, %28 : vector<32x16xf32>
    %c0_16 = arith.constant 0 : index
    %c16 = arith.constant 16 : index
    %36 = vector.load %arg10[%c0_16, %c16] : memref<32x128xf32, #tpu.memory_space<vmem>>, vector<32x16xf32>
    tpu.vector_store %arg10[%c0_16, %c16], %35 {strides = array<i32>} : memref<32x128xf32, #tpu.memory_space<vmem>>, vector<32x16xf32>,
    %37 = vector.extract_strided_slice %22 {offsets = [0, 2], sizes = [32, 1], strides = [1, 1]} : vector<32x8xf32> to vector<32x1xf32>
    %38 = vector.broadcast %37 : vector<32x1xf32> to vector<32x16xf32>
    %39 = arith.mulf %38, %28 : vector<32x16xf32>
    %c0_17 = arith.constant 0 : index
    %c32 = arith.constant 32 : index
    %40 = vector.load %arg10[%c0_17, %c32] : memref<32x128xf32, #tpu.memory_space<vmem>>, vector<32x16xf32>
    tpu.vector_store %arg10[%c0_17, %c32], %39 {strides = array<i32>} : memref<32x128xf32, #tpu.memory_space<vmem>>, vector<32x16xf32>,
    %41 = vector.extract_strided_slice %22 {offsets = [0, 3], sizes = [32, 1], strides = [1, 1]} : vector<32x8xf32> to vector<32x1xf32>
    %42 = vector.broadcast %41 : vector<32x1xf32> to vector<32x16xf32>
    %43 = arith.mulf %42, %28 : vector<32x16xf32>
    %c0_18 = arith.constant 0 : index
    %c48 = arith.constant 48 : index
    %44 = vector.load %arg10[%c0_18, %c48] : memref<32x128xf32, #tpu.memory_space<vmem>>, vector<32x16xf32>
    tpu.vector_store %arg10[%c0_18, %c48], %43 {strides = array<i32>} : memref<32x128xf32, #tpu.memory_space<vmem>>, vector<32x16xf32>,
    %45 = vector.extract_strided_slice %22 {offsets = [0, 4], sizes = [32, 1], strides = [1, 1]} : vector<32x8xf32> to vector<32x1xf32>
    %46 = vector.broadcast %45 : vector<32x1xf32> to vector<32x16xf32>
    %47 = arith.mulf %46, %28 : vector<32x16xf32>
    %c0_19 = arith.constant 0 : index
    %c64 = arith.constant 64 : index
    %48 = vector.load %arg10[%c0_19, %c64] : memref<32x128xf32, #tpu.memory_space<vmem>>, vector<32x16xf32>
    tpu.vector_store %arg10[%c0_19, %c64], %47 {strides = array<i32>} : memref<32x128xf32, #tpu.memory_space<vmem>>, vector<32x16xf32>,
    %49 = vector.extract_strided_slice %22 {offsets = [0, 5], sizes = [32, 1], strides = [1, 1]} : vector<32x8xf32> to vector<32x1xf32>
    %50 = vector.broadcast %49 : vector<32x1xf32> to vector<32x16xf32>
    %51 = arith.mulf %50, %28 : vector<32x16xf32>
    %c0_20 = arith.constant 0 : index
    %c80 = arith.constant 80 : index
    %52 = vector.load %arg10[%c0_20, %c80] : memref<32x128xf32, #tpu.memory_space<vmem>>, vector<32x16xf32>
    tpu.vector_store %arg10[%c0_20, %c80], %51 {strides = array<i32>} : memref<32x128xf32, #tpu.memory_space<vmem>>, vector<32x16xf32>,
    %53 = vector.extract_strided_slice %22 {offsets = [0, 6], sizes = [32, 1], strides = [1, 1]} : vector<32x8xf32> to vector<32x1xf32>
    %54 = vector.broadcast %53 : vector<32x1xf32> to vector<32x16xf32>
    %55 = arith.mulf %54, %28 : vector<32x16xf32>
    %c0_21 = arith.constant 0 : index
    %c96 = arith.constant 96 : index
    %56 = vector.load %arg10[%c0_21, %c96] : memref<32x128xf32, #tpu.memory_space<vmem>>, vector<32x16xf32>
    tpu.vector_store %arg10[%c0_21, %c96], %55 {strides = array<i32>} : memref<32x128xf32, #tpu.memory_space<vmem>>, vector<32x16xf32>,
    %57 = vector.extract_strided_slice %22 {offsets = [0, 7], sizes = [32, 1], strides = [1, 1]} : vector<32x8xf32> to vector<32x1xf32>
    %58 = vector.broadcast %57 : vector<32x1xf32> to vector<32x16xf32>
    %59 = arith.mulf %58, %28 : vector<32x16xf32>
    %c0_22 = arith.constant 0 : index
    %c112 = arith.constant 112 : index
    %60 = vector.load %arg10[%c0_22, %c112] : memref<32x128xf32, #tpu.memory_space<vmem>>, vector<32x16xf32>
    tpu.vector_store %arg10[%c0_22, %c112], %59 {strides = array<i32>} : memref<32x128xf32, #tpu.memory_space<vmem>>, vector<32x16xf32>,
    %c0_23 = arith.constant 0 : index
    %c0_24 = arith.constant 0 : index
    %61 = vector.load %arg10[%c0_23, %c0_24] : memref<32x128xf32, #tpu.memory_space<vmem>>, vector<32x128xf32>
    %c0_25 = arith.constant 0 : index
    %c0_26 = arith.constant 0 : index
    %62 = vector.load %arg7[%c0_25, %c0_26] : memref<128x4xf32, #tpu.memory_space<vmem>>, vector<128x4xf32>
    %cst_27 = arith.constant dense<0.000000e+00> : vector<32x4xf32>
    %63 = tpu.matmul %61, %62, %cst_27 {dimension_numbers = #tpu.dot_dimension_numbers<[1], [0], [0], [1], [0, 0, 1, 1], [], []>} : vector<32x128xf32>, vector<128x4xf32>, vector<32x4xf32> -> vector<32x4xf32>
    %c0_28 = arith.constant 0 : index
    %c0_29 = arith.constant 0 : index
    %64 = vector.load %arg8[%c0_28, %c0_29] : memref<8x4xf32, #tpu.memory_space<vmem>>, vector<8x4xf32>
    %cst_30 = arith.constant dense<0.000000e+00> : vector<32x4xf32>
    %65 = tpu.matmul %22, %64, %cst_30 {dimension_numbers = #tpu.dot_dimension_numbers<[1], [0], [0], [1], [0, 0, 1, 1], [], []>} : vector<32x8xf32>, vector<8x4xf32>, vector<32x4xf32> -> vector<32x4xf32>
    %66 = arith.addf %63, %65 : vector<32x4xf32>
    %c0_31 = arith.constant 0 : index
    %c0_32 = arith.constant 0 : index
    %67 = vector.load %arg9[%c0_31, %c0_32] : memref<32x4xf32, #tpu.memory_space<vmem>>, vector<32x4xf32>
    tpu.vector_store %arg9[%c0_31, %c0_32], %66 {strides = array<i32>} : memref<32x4xf32, #tpu.memory_space<vmem>>, vector<32x4xf32>,
    return
  }
  func.func @transform_0(%arg0: i32) -> (i32, i32) {
    %c0_i32 = arith.constant 0 : i32
    %c0_i32_0 = arith.constant 0 : i32
    return %arg0, %c0_i32 : i32, i32
  }
  func.func @transform_1(%arg0: i32) -> (i32, i32) {
    %c0_i32 = arith.constant 0 : i32
    %c0_i32_0 = arith.constant 0 : i32
    %c0_i32_1 = arith.constant 0 : i32
    return %c0_i32, %c0_i32_0 : i32, i32
  }
  func.func @transform_2(%arg0: i32) -> (i32, i32) {
    %c0_i32 = arith.constant 0 : i32
    %c0_i32_0 = arith.constant 0 : i32
    %c0_i32_1 = arith.constant 0 : i32
    return %c0_i32, %c0_i32_0 : i32, i32
  }
  func.func @transform_3(%arg0: i32) -> (i32, i32) {
    %c0_i32 = arith.constant 0 : i32
    %c0_i32_0 = arith.constant 0 : i32
    %c0_i32_1 = arith.constant 0 : i32
    return %c0_i32, %c0_i32_0 : i32, i32
  }
  func.func @transform_4(%arg0: i32) -> (i32, i32) {
    %c0_i32 = arith.constant 0 : i32
    %c0_i32_0 = arith.constant 0 : i32
    %c0_i32_1 = arith.constant 0 : i32
    return %c0_i32, %c0_i32_0 : i32, i32
  }
  func.func @transform_5(%arg0: i32) -> (i32, i32) {
    %c0_i32 = arith.constant 0 : i32
    %c0_i32_0 = arith.constant 0 : i32
    %c0_i32_1 = arith.constant 0 : i32
    return %c0_i32, %c0_i32_0 : i32, i32
  }
  func.func @transform_6(%arg0: i32) -> (i32, i32) {
    %c0_i32 = arith.constant 0 : i32
    %c0_i32_0 = arith.constant 0 : i32
    %c0_i32_1 = arith.constant 0 : i32
    return %c0_i32, %c0_i32_0 : i32, i32
  }
  func.func @transform_7(%arg0: i32) -> (i32, i32) {
    %c0_i32 = arith.constant 0 : i32
    %c0_i32_0 = arith.constant 0 : i32
    %c0_i32_1 = arith.constant 0 : i32
    return %c0_i32, %c0_i32_0 : i32, i32
  }
  func.func @transform_8(%arg0: i32) -> (i32, i32) {
    %c0_i32 = arith.constant 0 : i32
    %c0_i32_0 = arith.constant 0 : i32
    return %arg0, %c0_i32 : i32, i32
  }
}

</mosaic_0001>

<bundles_post_ra>
// kernel: fuzzy_nn_forward.1
= control target key start
LH: loop header
LB: loop body
LE: loop exit
PB: predicated region body
PF: predicated region fallthrough
CT: control target
= control target key end

     0   :  { %s1398_s27 = smov 0   ;;  %s1700_s0 = inlined_call_operand.vmem [shape: f32[64,16], index: 0, kind: input, shape index: {}]   ;;  %s1701_s1 = inlined_call_operand.vmem [shape: f32[32,8], index: 1, kind: input, shape index: {}]   ;;  %s1702_s2 = inlined_call_operand.vmem [shape: f32[1,8], index: 2, kind: input, shape index: {}]   ;;  %s1703_s3 = inlined_call_operand.vmem [shape: f32[1,8], index: 3, kind: input, shape index: {}]   ;;  %s1704_s4 = inlined_call_operand.vmem [shape: f32[1,16], index: 4, kind: input, shape index: {}]   ;;  %s1705_s5 = inlined_call_operand.vmem [shape: f32[1,16], index: 5, kind: input, shape index: {}]   ;;  %s1706_s6 = inlined_call_operand.vmem [shape: f32[128,4], index: 6, kind: input, shape index: {}]   ;;  %s1707_s7 = inlined_call_operand.vmem [shape: f32[8,4], index: 7, kind: input, shape index: {}]   ;;  %s1708_s8 = inlined_call_operand.vmem [shape: f32[64,4], index: 8, kind: output, shape index: {}]  }
   0x1 LB: > { %s1100_s28 = sadd.s32 4294967295, %s1336_s27   ;;  %p1104_p0 = scmp.ge.s32.totalorder %s1336_s27, 1  ;;  %s1336_s27 = sphi %s1398_s27, %s18_s27  }
   0x2   : > { %p263_p1 = scmp.lt.s32.totalorder %s1336_s27, 3 }
   0x4   : > { %p264_p2 = pnand %p1104_p0, %p263_p1 }
   0x5   : > { %s1105_s29 = sshll.u32 (!%p264_p2), %s1100_s28, 2  ;;  %v338_v0 = vld [vmem:[%s1701_s1] sm:$0xff] (!%p264_p2)  ;;  %v339_v1 = vld [vmem:[%s1701_s1 + $0x8] sm:$0xff] (!%p264_p2)  ;;  %v340_v2 = vld [vmem:[%s1701_s1 + $0x10] sm:$0xff] (!%p264_p2)  ;;  %s1338_s22 = smov (!%p264_p2), 16   ;;  %vm333_vm0 = vcmask (!%p264_p2), 130048  }
   0x6   : > { %267 = sbr.rel (%p264_p2) target bundleno = 1094 (0x446), region = 52  ;;  %p298_p3 = scmp.lt.s32.totalorder (!%p264_p2), %s1105_s29, 7  ;;  %v1216_v3 = vpack.c.bf16 (!%p264_p2), %v339_v1, %v338_v0  ;;  %v341_v4 = vld [vmem:[%s1701_s1 + $0x18] sm:$0xff] (!%p264_p2)  ;;  %v1431_v8 = vld [vmem:[%s1704_s4] ss:$0 sm:$0xff] (!%p264_p2)  ;;  %vm349_vm1 = vcmask (!%p264_p2), 261120  }
   0x7   : > { %v1220_v5 = vpack.c.bf16 (!%p264_p2), %v341_v4, %v340_v2  ;;  %v1444_v12 = vld [vmem:[%s1705_s5] ss:$0 sm:$0xff] (!%p264_p2)  ;;  %vm466_vm2 = vcmask (!%p264_p2), 64512   ;;  %v1339_v52 = vmov (!%p264_p2), 2   ;;  %v1340_v53 = vmov (!%p264_p2), 1   ;;  %s1347_s11 = smov (!%p264_p2), 32  }
   0x8   : > { %1217 = vmatprep.subr.bf16.mxu0 (!%p264_p2), %v1216_v3  ;;  %v1109_v26 = vld [vmem:[%s1702_s2] ss:$0 sm:$0xff] (!%p264_p2)  ;;  %1284 = vset.pattern.permute.xlu1 (!%p264_p2), %v1339_v52  ;;  %s1348_s12 = smov (!%p264_p2), 48   ;;  %s1349_s13 = smov (!%p264_p2), 64   ;;  %vm589_vm3 = vcmask (!%p264_p2), 261248   ;;  %vm630_vm4 = vcmask (!%p264_p2), 392448  }
   0x9   : > { %1219 = vmatpush3.bf16.msra.mxu0 (!%p264_p2), %v1216_v3  ;;  %v1114_v39 = vld [vmem:[%s1703_s3] ss:$0 sm:$0xff] (!%p264_p2)  ;;  %1283 = vset.pattern.permute.xlu0 (!%p264_p2), %v1340_v53  ;;  %s1351_s25 = smov (!%p264_p2), 96   ;;  %s1352_s10 = smov (!%p264_p2), 112   ;;  %vm671_vm5 = vcmask (!%p264_p2), 523648   ;;  %vm712_vm6 = vcmask (!%p264_p2), 654848  }
   0xa   : > { %1221 = vmatprep.subr.bf16.mxu0 (!%p264_p2), %v1220_v5  ;;  %v860_v54 = vld [vmem:[%s1707_s7] sm:$0xff] (!%p264_p2)  ;;  %vm753_vm7 = vcmask (!%p264_p2), 786048   ;;  %vm794_vm8 = vcmask (!%p264_p2), 917248   ;;  %vm835_vm9 = vcmask (!%p264_p2), 1048448   ;;  %vm1039_vm10 = vcmask (!%p264_p2), 31744  }
   0xd   : > { %s1710_s29 = smov (!%p298_p3, %s1105_s29), 7  ;;  %1223 = vmatpush3.bf16.msra.mxu0 %v1220_v5 }
   0xe   : > { %s1106_s16 = sshll.u32 %s1710_s29, 3  ;;  %1170 = vmatprep.subr.mxu0 %v860_v54 }
   0xf   : > { %s301_s19 = scalar_lea.vmem %s1700_s0, %s1106_s16 }
  0x10   : > { %v1426_v6 = vld [vmem:[%s301_s19] sm:$0xff]  ;;  %v311_v7 = vld [vmem:[%s301_s19 + $0x10] sm:$0xff]  ;;  %v1437_v10 = vld [vmem:[%s301_s19 + $0x8] sm:$0xff] }
  0x11   : > { %321 = vrot.lane.b32.xlu0 %v1426_v6, %s1338_s22  ;;  %325 = vrot.lane.b32.xlu1 %v311_v7, %s1338_s22  ;;  %v512_v9 = vmul.f32 %v1431_v8, %v311_v7  ;;  %v1439_v11 = vld [vmem:[%s301_s19 + $0x18] sm:$0xff]  ;;  %v313_v14 = vmul.f32 %v1426_v6, %v1426_v6  ;;  %v315_v15 = vmul.f32 %v311_v7, %v311_v7  ;;  %s1350_s19 = smov 80  }
  0x12   : > { %v314_v18 = vmul.f32 %v1437_v10, %v1437_v10  ;;  %v316_v20 = vmul.f32 %v1439_v11, %v1439_v11 }
  0x13   : > { %v1447_v13 = vadd.f32 %v1444_v12, %v512_v9 }
  0x15   : > { %323 = vrot.lane.b32.xlu0 %v1437_v10, %s1338_s22  ;;  %327 = vrot.lane.b32.xlu1 %v1439_v11, %s1338_s22 }
  0x83   : > { %v322_v16 = vpop.permute.xlu0 %321  ;;  %v326_v17 = vpop.permute.xlu1 %325 }
  0x84   : > { %v334_v19 = vsel %vm333_vm0, %v313_v14, %v322_v16  ;;  %v336_v21 = vsel %vm333_vm0, %v315_v15, %v326_v17 }
  0x85   : > { %1164 = vmatprep.mubr.msk.f32.mxu0 %vm349_vm1, %v334_v19 }
  0x87   : > { %v324_v22 = vpop.permute.xlu0 %323  ;;  %v328_v23 = vpop.permute.xlu1 %327 }
  0x88   : > { %v335_v24 = vsel %vm333_vm0, %v314_v18, %v324_v22  ;;  %v337_v25 = vsel %vm333_vm0, %v316_v20, %v328_v23  ;;  %v1341_v23 = vmov 3  }
  0x89   : > { %1165 = vmatmul.mubr.msk.f32.vlgmr.msra.gmra.mrb[0].mxu0 %vm349_vm1, %v335_v24  ;;  %v1342_v24 = vmov 5  }
  0x8a   : > { %1167 = vmatprep.mubr.msk.f32.mxu0 %vm349_vm1, %v336_v21  ;;  %1171 = vmatpush3.msra.mxu0 %v860_v54 }
  0x8d   : > { %1168 = vmatmul.mubr.msk.f32.gmra.mrb[2].mxu0 %vm349_vm1, %v337_v25 }
 0x15c   : > { %v1166_v27 = vpop.f32.mrb[0].mxu0 }
 0x15d   : > { %v434_v28 = vadd.f32 %v1166_v27, %v1109_v26  ;;  %v428_v29 = vpop.f32.mrb[1].mxu0  ;;  %v1343_v27 = vmov 4  }
 0x15e   : > { %v429_v30 = vadd.f32 %v1109_v26, %v428_v29  ;;  %v1345_v29 = vmov 6  }
 0x15f   : > { %v449_v31 = vmul.f32 1.442695, %v434_v28  ;;  %v1344_v28 = vmov 7  }
 0x160   : > { %v447_v32 = vmul.f32 1.442695, %v429_v30  ;;  %v1169_v33 = vpop.f32.mrb[2].mxu0  ;;  %v1346_v30 = vmov 0  }
 0x161   : > { %1314 = vpow2.f32 %v449_v31  ;;  %v444_v34 = vadd.f32 %v1169_v33, %v1109_v26  ;;  %v438_v35 = vpop.f32.mrb[3].mxu0  ;;  %v511_v31 = vmul.f32 %v1431_v8, %v1437_v10 }
 0x162   : > { %1316 = vpow2.f32 %v447_v32  ;;  %v439_v36 = vadd.f32 %v1109_v26, %v438_v35 }
 0x163   : > { %v453_v37 = vmul.f32 1.442695, %v444_v34  ;;  %v1513_v32 = vadd.f32 %v1444_v12, %v511_v31 }
 0x164   : > { %v451_v38 = vmul.f32 1.442695, %v439_v36 }
 0x165   : > { %1318 = vpow2.f32 %v453_v37 }
 0x166   : > { %1320 = vpow2.f32 %v451_v38 }
 0x16b   : > { %v1315_v40 = vpop.eup %1314 }
 0x16c   : > { %v1317_v41 = vpop.eup %1316  ;;  %v463_v42 = vmul.f32 %v1315_v40, %v1114_v39 }
 0x16d   : > { %v462_v43 = vmul.f32 %v1317_v41, %v1114_v39 }
 0x16e   : > { %v470_v44 = vsel %vm466_vm2, %v463_v42, 0.0 }
 0x16f   : > { %v1319_v45 = vpop.eup %1318  ;;  %471 = vadd.xlane.f32.xlu1 %v470_v44  ;;  %v467_v46 = vsel %vm466_vm2, %v462_v43, 0.0  ;;  %v844_v44 = vld [vmem:[%s1706_s6] sm:$0xff] }
 0x170   : > { %v1321_v47 = vpop.eup %1320  ;;  %468 = vadd.xlane.f32.xlu0 %v467_v46  ;;  %v465_v49 = vmul.f32 %v1319_v45, %v1114_v39  ;;  %v845_v45 = vld [vmem:[%s1706_s6 + $0x8] sm:$0xff] }
 0x171   : > { %v464_v48 = vmul.f32 %v1321_v47, %v1114_v39  ;;  %v1224_v47 = vpack.c.bf16 %v845_v45, %v844_v44 }
 0x172   : > { %v476_v51 = vsel %vm466_vm2, %v465_v49, 0.0 }
 0x173   : > { %v473_v50 = vsel %vm466_vm2, %v464_v48, 0.0  ;;  %1225 = vmatprep.subr.bf16.mxu1 %v1224_v47 }
 0x174   : > { %474 = vadd.xlane.f32.xlu0 %v473_v50  ;;  %1227 = vmatpush3.bf16.msra.mxu1 %v1224_v47  ;;  %v846_v50 = vld [vmem:[%s1706_s6 + $0x10] sm:$0xff] }
 0x178   : > { %477 = vadd.xlane.f32.xlu0 %v476_v51  ;;  %v847_v51 = vld [vmem:[%s1706_s6 + $0x18] sm:$0xff] }
 0x1fc   : > { %v472_v55 = vpop.xlane.xlu1 %471 }
 0x1fd   : > { %v480_v56 = vadd.f32 1e-10, %v472_v55  ;;  %v469_v57 = vpop.xlane.xlu0 %468 }
 0x1fe   : > { %v479_v58 = vadd.f32 1e-10, %v469_v57  ;;  %v849_v57 = vld [vmem:[%s1706_s6 + $0x28] sm:$0xff] }
 0x1ff   : > { %1322 = vrcp.f32 %v480_v56 }
 0x200   : > { %1324 = vrcp.f32 %v479_v58 }
 0x201   : > { %v475_v59 = vpop.xlane.xlu0 %474 }
 0x202   : > { %v481_v60 = vadd.f32 1e-10, %v475_v59 }
 0x204   : > { %1326 = vrcp.f32 %v481_v60 }
 0x205   : > { %v478_v61 = vpop.xlane.xlu0 %477 }
 0x206   : > { %v482_v62 = vadd.f32 1e-10, %v478_v61 }
 0x208   : > { %1328 = vrcp.f32 %v482_v62 }
 0x209   : > { %v1323_v63 = vpop.eup %1322 }
 0x20a   : > { %v1325_v0 = vpop.eup %1324  ;;  %v488_v1 = vmul.f32 %v1323_v63, %v480_v56  ;;  %v848_v56 = vld [vmem:[%s1706_s6 + $0x20] sm:$0xff] }
 0x20b   : > { %v487_v2 = vmul.f32 %v1325_v0, %v479_v58  ;;  %v1232_v58 = vpack.c.bf16 %v849_v57, %v848_v56 }
 0x20c   : > { %v492_v3 = vsub.f32 2.0, %v488_v1 }
 0x20d   : > { %v491_v4 = vsub.f32 2.0, %v487_v2 }
 0x20e   : > { %v1327_v5 = vpop.eup %1326  ;;  %v496_v7 = vmul.f32 %v1323_v63, %v492_v3  ;;  %v851_v63 = vld [vmem:[%s1706_s6 + $0x38] sm:$0xff] }
 0x20f   : > { %v495_v9 = vmul.f32 %v1325_v0, %v491_v4  ;;  %v489_v14 = vmul.f32 %v1327_v5, %v481_v60  ;;  %v852_v4 = vld [vmem:[%s1706_s6 + $0x40] sm:$0xff] }
 0x210   : > { %v500_v15 = vmul.f32 %v496_v7, %v463_v42 }
 0x211   : > { %v1478_v16 = vmul.f32 %v495_v9, %v462_v43  ;;  %v493_v17 = vsub.f32 2.0, %v489_v14  ;;  %v513_v9 = vmul.f32 %v1431_v8, %v1439_v11 }
 0x212   : > { %v1329_v18 = vpop.eup %1328  ;;  %599 = vperm.xlu1 %1284, %v500_v15   ;;  %558 = vperm.xlu0 %1283, %v500_v15  }
 0x213   : > { %v497_v19 = vmul.f32 %v1327_v5, %v493_v17  ;;  %v490_v20 = vmul.f32 %v1329_v18, %v482_v62  ;;  %1172 = vmatprep.mubr.msk.f32.mxu0 %vm466_vm2, %v1478_v16  ;;  %v850_v62 = vld [vmem:[%s1706_s6 + $0x30] sm:$0xff]  ;;  %v853_v5 = vld [vmem:[%s1706_s6 + $0x48] sm:$0xff]  ;;  %v855_v17 = vld [vmem:[%s1706_s6 + $0x58] sm:$0xff] }
 0x214   : > { %1173 = vmatmul.mubr.msk.f32.vlgmr.msra.gmra.mrb[4].mxu0 %vm466_vm2, %v500_v15  ;;  %v1236_v0 = vpack.c.bf16 %v851_v63, %v850_v62  ;;  %v1240_v7 = vpack.c.bf16 %v853_v5, %v852_v4 }
 0x215   : > { %v1483_v21 = vmul.f32 %v497_v19, %v464_v48  ;;  %v494_v22 = vsub.f32 2.0, %v490_v20  ;;  %v510_v48 = vmul.f32 %v1431_v8, %v1426_v6  ;;  %v1589_v8 = vadd.f32 %v1444_v12, %v513_v9  ;;  %v856_v20 = vld [vmem:[%s1706_s6 + $0x60] sm:$0xff] }
 0x216   : > { %1285 = vset.pattern.permute.xlu1 %v1341_v23  ;;  %1287 = vset.pattern.permute.xlu0 %v1342_v24 }
 0x217   : > { %v498_v25 = vmul.f32 %v1329_v18, %v494_v22  ;;  %640 = vperm.xlu1 %1285, %v500_v15   ;;  %722 = vperm.xlu0 %1287, %v500_v15   ;;  %v1546_v6 = vadd.f32 %v1444_v12, %v510_v48 }
 0x218   : > { %1175 = vmatprep.mubr.msk.f32.mxu0 %vm466_vm2, %v1483_v21 }
 0x219   : > { %v502_v26 = vmul.f32 %v498_v25, %v465_v49 }
 0x21b   : > { %1286 = vset.pattern.permute.xlu1 %v1343_v27  ;;  %1289 = vset.pattern.permute.xlu0 %v1344_v28 }
 0x21c   : > { %1176 = vmatmul.mubr.msk.f32.gmra.mrb[6].mxu0 %vm466_vm2, %v502_v26  ;;  %681 = vperm.xlu1 %1286, %v500_v15  }
 0x21d   : > { %804 = vperm.xlu0 %1289, %v500_v15  }
 0x220   : > { %1288 = vset.pattern.permute.xlu1 %v1345_v29 }
 0x221   : > { %1297 = vset.pattern.permute.xlu0 %v1340_v53  ;;  %763 = vperm.xlu1 %1288, %v500_v15  }
 0x222   : > { %566 = vperm.xlu0 %1297, %v502_v26  }
 0x225   : > { %1290 = vset.pattern.permute.xlu1 %v1340_v53 }
 0x226   : > { %1299 = vset.pattern.permute.xlu0 %v1341_v23  ;;  %554 = vperm.xlu1 %1290, %v1478_v16  }
 0x227   : > { %648 = vperm.xlu0 %1299, %v502_v26  }
 0x22a   : > { %1291 = vset.pattern.permute.xlu1 %v1339_v52 }
 0x22b   : > { %1301 = vset.pattern.permute.xlu0 %v1342_v24  ;;  %595 = vperm.xlu1 %1291, %v1478_v16  }
 0x22c   : > { %730 = vperm.xlu0 %1301, %v502_v26  }
 0x22f   : > { %1292 = vset.pattern.permute.xlu1 %v1341_v23 }
 0x230   : > { %1305 = vset.pattern.permute.xlu0 %v1341_v23  ;;  %636 = vperm.xlu1 %1292, %v1478_v16  }
 0x231   : > { %644 = vperm.xlu0 %1305, %v1483_v21  }
 0x234   : > { %1293 = vset.pattern.permute.xlu1 %v1343_v27 }
 0x235   : > { %1311 = vset.pattern.permute.xlu0 %v1344_v28  ;;  %677 = vperm.xlu1 %1293, %v1478_v16  }
 0x236   : > { %808 = vperm.xlu0 %1311, %v1483_v21  }
 0x239   : > { %1294 = vset.pattern.permute.xlu1 %v1342_v24 }
 0x23a   : > { %1312 = vset.pattern.permute.xlu0 %v1346_v30  ;;  %718 = vperm.xlu1 %1294, %v1478_v16  }
 0x23b   : > { %532 = vperm.xlu0 %1312, %v500_v15  }
 0x23e   : > { %1295 = vset.pattern.permute.xlu1 %v1345_v29 }
 0x23f   : > { %759 = vperm.xlu1 %1295, %v1478_v16   ;;  %1313 = vset.pattern.permute.xlu0 %v1344_v28 }
 0x243   : > { %1296 = vset.pattern.permute.xlu1 %v1344_v28 }
 0x244   : > { %800 = vperm.xlu1 %1296, %v1478_v16  }
 0x248   : > { %1298 = vset.pattern.permute.xlu1 %v1339_v52 }
 0x249   : > { %607 = vperm.xlu1 %1298, %v502_v26  }
 0x24d   : > { %1300 = vset.pattern.permute.xlu1 %v1343_v27 }
 0x24e   : > { %689 = vperm.xlu1 %1300, %v502_v26  }
 0x252   : > { %1302 = vset.pattern.permute.xlu1 %v1345_v29 }
 0x253   : > { %771 = vperm.xlu1 %1302, %v502_v26  }
 0x257   : > { %1303 = vset.pattern.permute.xlu1 %v1340_v53  ;;  %v1228_v53 = vpack.c.bf16 %v847_v51, %v846_v50 }
 0x258   : > { %562 = vperm.xlu1 %1303, %v1483_v21  }
 0x259   : > { %1229 = vmatprep.subr.bf16.mxu1 %v1228_v53 }
 0x25a   : > { %1231 = vmatpush3.bf16.msra.mxu1 %v1228_v53 }
 0x25b   : > { %1233 = vmatprep.subr.bf16.mxu1 %v1232_v58 }
 0x25c   : > { %1304 = vset.pattern.permute.xlu1 %v1339_v52 }
 0x25d   : > { %603 = vperm.xlu1 %1304, %v1483_v21  }
 0x25e   : > { %1235 = vmatpush3.bf16.msra.mxu1 %v1232_v58 }
 0x25f   : > { %1237 = vmatprep.subr.bf16.mxu1 %v1236_v0 }
 0x261   : > { %1306 = vset.pattern.permute.xlu1 %v1343_v27  ;;  %v858_v27 = vld [vmem:[%s1706_s6 + $0x70] sm:$0xff] }
 0x262   : > { %685 = vperm.xlu1 %1306, %v1483_v21   ;;  %1239 = vmatpush3.bf16.msra.mxu1 %v1236_v0 }
 0x263   : > { %1241 = vmatprep.subr.bf16.mxu1 %v1240_v7 }
 0x266   : > { %1307 = vset.pattern.permute.xlu1 %v1342_v24  ;;  %1243 = vmatpush3.bf16.msra.mxu1 %v1240_v7 }
 0x267   : > { %726 = vperm.xlu1 %1307, %v1483_v21  }
 0x26b   : > { %1308 = vset.pattern.permute.xlu1 %v1345_v29 }
 0x26c   : > { %767 = vperm.xlu1 %1308, %v1483_v21  }
 0x270   : > { %1309 = vset.pattern.permute.xlu1 %v1344_v28  ;;  %v859_v28 = vld [vmem:[%s1706_s6 + $0x78] sm:$0xff] }
 0x271   : > { %812 = vperm.xlu1 %1309, %v502_v26   ;;  %v1252_v29 = vpack.c.bf16 %v859_v28, %v858_v27 }
 0x275   : > { %1310 = vset.pattern.permute.xlu1 %v1346_v30 }
 0x276   : > { %527 = vperm.xlu1 %1310, %v1478_v16   ;;  %v854_v16 = vld [vmem:[%s1706_s6 + $0x50] sm:$0xff] }
 0x277   : > { %v1244_v19 = vpack.c.bf16 %v855_v17, %v854_v16 }
 0x279   : > { %1245 = vmatprep.subr.bf16.mxu1 %v1244_v19 }
 0x27a   : > { %542 = vperm.xlu1 %1310, %v502_v26   ;;  %1247 = vmatpush3.bf16.msra.mxu1 %v1244_v19 }
 0x27e   : > { %537 = vperm.xlu1 %1310, %v1483_v21   ;;  %v857_v21 = vld [vmem:[%s1706_s6 + $0x68] sm:$0xff] }
 0x27f   : > { %v1248_v23 = vpack.c.bf16 %v857_v21, %v856_v20 }
 0x281   : > { %1249 = vmatprep.subr.bf16.mxu1 %v1248_v23 }
 0x282   : > { %1251 = vmatpush3.bf16.msra.mxu1 %v1248_v23 }
 0x283   : > { %1253 = vmatprep.subr.bf16.mxu1 %v1252_v29 }
 0x286   : > { %1255 = vmatpush3.bf16.msra.mxu1 %v1252_v29 }
 0x291   : > { %v600_v33 = vpop.permute.xlu1 %599  ;;  %v559_v34 = vpop.permute.xlu0 %558 }
 0x292   : > { %v570_v35 = vmul.f32 %v559_v34, %v1513_v32  ;;  %v611_v36 = vmul.f32 %v600_v33, %v1513_v32 }
 0x294   : > { %579 = vrot.lane.b32.xlu1 %v570_v35, %s1338_s22 }
 0x296   : > { %v641_v37 = vpop.permute.xlu1 %640  ;;  %v723_v38 = vpop.permute.xlu0 %722 }
 0x297   : > { %v652_v39 = vmul.f32 %v641_v37, %v1513_v32  ;;  %v734_v42 = vmul.f32 %v723_v38, %v1513_v32 }
 0x298   : > { %620 = vrot.lane.b32.xlu1 %v611_v36, %s1347_s11 }
 0x29b   : > { %v682_v40 = vpop.permute.xlu1 %681 }
 0x29c   : > { %v693_v10 = vmul.f32 %v682_v40, %v1513_v32  ;;  %v805_v41 = vpop.permute.xlu0 %804  ;;  %661 = vrot.lane.b32.xlu1 %v652_v39, %s1348_s12 }
 0x29d   : > { %v816_v55 = vmul.f32 %v805_v41, %v1513_v32 }
 0x29e   : > { %702 = vrot.lane.b32.xlu0 %v693_v10, %s1349_s13 }
 0x2a0   : > { %v764_v43 = vpop.permute.xlu1 %763 }
 0x2a1   : > { %v1530_v46 = vpop.permute.xlu0 %566  ;;  %v775_v49 = vmul.f32 %v764_v43, %v1513_v32 }
 0x2a2   : > { %743 = vrot.lane.b32.xlu0 %v734_v42, %s1350_s19  ;;  %v572_v26 = vmul.f32 %v1530_v46, %v1589_v8 }
 0x2a5   : > { %v555_v52 = vpop.permute.xlu1 %554 }
 0x2a6   : > { %v1542_v54 = vpop.permute.xlu0 %648  ;;  %784 = vrot.lane.b32.xlu0 %v775_v49, %s1351_s25  ;;  %v569_v61 = vmul.f32 %v555_v52, %v1546_v6 }
 0x2a7   : > { %v654_v36 = vmul.f32 %v1542_v54, %v1589_v8 }
 0x2aa   : > { %v596_v59 = vpop.permute.xlu1 %595  ;;  %825 = vrot.lane.b32.xlu0 %v816_v55, %s1352_s10 }
 0x2ab   : > { %v1556_v60 = vpop.permute.xlu0 %730  ;;  %v610_v2 = vmul.f32 %v596_v59, %v1546_v6 }
 0x2ac   : > { %v736_v39 = vmul.f32 %v1556_v60, %v1589_v8 }
 0x2ae   : > { %577 = vrot.lane.b32.xlu0 %v569_v61, %s1338_s22 }
 0x2af   : > { %v637_v1 = vpop.permute.xlu1 %636 }
 0x2b0   : > { %v1567_v3 = vpop.permute.xlu0 %644  ;;  %v651_v14 = vmul.f32 %v637_v1, %v1546_v6 }
 0x2b1   : > { %v653_v46 = vmul.f32 %v1567_v3, %v1447_v13 }
 0x2b2   : > { %618 = vrot.lane.b32.xlu0 %v610_v2, %s1347_s11 }
 0x2b4   : > { %v678_v15 = vpop.permute.xlu1 %677 }
 0x2b5   : > { %v1585_v18 = vpop.permute.xlu0 %808  ;;  %v692_v11 = vmul.f32 %v678_v15, %v1546_v6 }
 0x2b6   : > { %659 = vrot.lane.b32.xlu0 %v651_v14, %s1348_s12  ;;  %v817_v55 = vmul.f32 %v1585_v18, %v1447_v13 }
 0x2b9   : > { %v719_v22 = vpop.permute.xlu1 %718 }
 0x2ba   : > { %v733_v24 = vmul.f32 %v719_v22, %v1546_v6  ;;  %v533_v25 = vpop.permute.xlu0 %532  ;;  %700 = vrot.lane.b32.xlu0 %v692_v11, %s1349_s13 }
 0x2bb   : > { %v546_v12 = vmul.f32 %v533_v25, %v1513_v32 }
 0x2bc   : > { %741 = vrot.lane.b32.xlu1 %v733_v24, %s1350_s19 }
 0x2bd   : > { %550 = vst.msk [vmem:[#allocation2 + $0x8] sm:$0xff] %vm333_vm0, %v546_v12 }
 0x2be   : > { %v760_v30 = vpop.permute.xlu1 %759  ;;  %583 = vrot.lane.b32.xlu0 %v572_v26, %s1338_s22 }
 0x2bf   : > { %v774_v31 = vmul.f32 %v760_v30, %v1546_v6 }
 0x2c1   : > { %782 = vrot.lane.b32.xlu1 %v774_v31, %s1351_s25 }
 0x2c3   : > { %v801_v32 = vpop.permute.xlu1 %800 }
 0x2c4   : > { %v815_v33 = vmul.f32 %v801_v32, %v1546_v6 }
 0x2c6   : > { %823 = vrot.lane.b32.xlu1 %v815_v33, %s1352_s10 }
 0x2c8   : > { %v608_v34 = vpop.permute.xlu1 %607 }
 0x2c9   : > { %v613_v35 = vmul.f32 %v608_v34, %v1589_v8 }
 0x2cb   : > { %624 = vrot.lane.b32.xlu0 %v613_v35, %s1347_s11 }
 0x2cd   : > { %v690_v37 = vpop.permute.xlu1 %689 }
 0x2ce   : > { %v695_v38 = vmul.f32 %v690_v37, %v1589_v8 }
 0x2cf   : > { %665 = vrot.lane.b32.xlu0 %v654_v36, %s1348_s12 }
 0x2d0   : > { %706 = vrot.lane.b32.xlu1 %v695_v38, %s1349_s13 }
 0x2d2   : > { %v772_v40 = vpop.permute.xlu1 %771 }
 0x2d3   : > { %v777_v10 = vmul.f32 %v772_v40, %v1589_v8 }
 0x2d4   : > { %747 = vrot.lane.b32.xlu1 %v736_v39, %s1350_s19 }
 0x2d7   : > { %v563_v41 = vpop.permute.xlu1 %562 }
 0x2d8   : > { %788 = vrot.lane.b32.xlu1 %v777_v10, %s1351_s25  ;;  %v571_v42 = vmul.f32 %v563_v41, %v1447_v13 }
 0x2dc   : > { %v604_v43 = vpop.permute.xlu1 %603  ;;  %581 = vrot.lane.b32.xlu1 %v571_v42, %s1338_s22 }
 0x2dd   : > { %v612_v44 = vmul.f32 %v604_v43, %v1447_v13 }
 0x2e0   : > { %622 = vrot.lane.b32.xlu1 %v612_v44, %s1347_s11 }
 0x2e1   : > { %v686_v45 = vpop.permute.xlu1 %685 }
 0x2e2   : > { %v694_v47 = vmul.f32 %v686_v45, %v1447_v13 }
 0x2e4   : > { %663 = vrot.lane.b32.xlu1 %v653_v46, %s1348_s12  ;;  %s307_s12 = scalar_lea.vmem %s1708_s8, %s1106_s16 }
 0x2e6   : > { %v727_v48 = vpop.permute.xlu1 %726 }
 0x2e7   : > { %v735_v49 = vmul.f32 %v727_v48, %v1447_v13  ;;  %v1637_v50 = vpop.f32.mrb[4].mxu0 }
 0x2e8   : > { %v1639_v51 = vpop.f32.mrb[5].mxu0  ;;  %704 = vrot.lane.b32.xlu1 %v694_v47, %s1349_s13 }
 0x2e9   : > { %745 = vrot.lane.b32.xlu0 %v735_v49, %s1350_s19 }
 0x2eb   : > { %v768_v52 = vpop.permute.xlu1 %767 }
 0x2ec   : > { %v776_v53 = vmul.f32 %v768_v52, %v1447_v13 }
 0x2ee   : > { %786 = vrot.lane.b32.xlu0 %v776_v53, %s1351_s25 }
 0x2ef   : > { %v1645_v54 = vpop.f32.mrb[6].mxu0 }
 0x2f0   : > { %v1649_v56 = vpop.f32.mrb[7].mxu0  ;;  %v813_v57 = vpop.permute.xlu1 %812 }
 0x2f1   : > { %v818_v58 = vmul.f32 %v813_v57, %v1589_v8 }
 0x2f2   : > { %827 = vrot.lane.b32.xlu0 %v817_v55, %s1352_s10 }
 0x2f3   : > { %829 = vrot.lane.b32.xlu1 %v818_v58, %s1352_s10 }
 0x2f5   : > { %v528_v59 = vpop.permute.xlu1 %527 }
 0x2f6   : > { %v545_v60 = vmul.f32 %v528_v59, %v1546_v6 }
 0x2f8   : > { %549 = vst.msk [vmem:[#allocation2] sm:$0xff] %vm333_vm0, %v545_v60 }
 0x2f9   : > { %v543_v61 = vpop.permute.xlu1 %542 }
 0x2fa   : > { %v548_v62 = vmul.f32 %v543_v61, %v1589_v8 }
 0x2fc   : > { %552 = vst.msk [vmem:[#allocation2 + $0x18] sm:$0xff] %vm333_vm0, %v548_v62 }
 0x2fd   : > { %v538_v63 = vpop.permute.xlu1 %537 }
 0x2fe   : > { %v547_v0 = vmul.f32 %v538_v63, %v1447_v13 }
 0x300   : > { %551 = vst.msk [vmem:[#allocation2 + $0x10] sm:$0xff] %vm333_vm0, %v547_v0 }
 0x306   : > { %v580_v1 = vpop.permute.xlu1 %579 }
 0x307   : > { %591 = vst.msk [vmem:[#allocation2 + $0x8] sm:$0xff] %vm589_vm3, %v580_v1 }
 0x30a   : > { %v621_v2 = vpop.permute.xlu1 %620 }
 0x30b   : > { %632 = vst.msk [vmem:[#allocation2 + $0x8] sm:$0xff] %vm630_vm4, %v621_v2 }
 0x30e   : > { %v662_v6 = vpop.permute.xlu1 %661 }
 0x30f   : > { %673 = vst.msk [vmem:[#allocation2 + $0x8] sm:$0xff] %vm671_vm5, %v662_v6 }
 0x310   : > { %v703_v3 = vpop.permute.xlu0 %702 }
 0x311   : > { %714 = vst.msk [vmem:[#allocation2 + $0x8] sm:$0xff] %vm712_vm6, %v703_v3 }
 0x314   : > { %v744_v13 = vpop.permute.xlu0 %743 }
 0x315   : > { %755 = vst.msk [vmem:[#allocation2 + $0x8] sm:$0xff] %vm753_vm7, %v744_v13 }
 0x318   : > { %v785_v4 = vpop.permute.xlu0 %784 }
 0x319   : > { %796 = vst.msk [vmem:[#allocation2 + $0x8] sm:$0xff] %vm794_vm8, %v785_v4 }
 0x31c   : > { %v826_v5 = vpop.permute.xlu0 %825 }
 0x31d   : > { %837 = vst.msk [vmem:[#allocation2 + $0x8] sm:$0xff] %vm835_vm9, %v826_v5 }
 0x320   : > { %v578_v7 = vpop.permute.xlu0 %577 }
 0x321   : > { %590 = vst.msk [vmem:[#allocation2] sm:$0xff] %vm589_vm3, %v578_v7 }
 0x324   : > { %v619_v9 = vpop.permute.xlu0 %618  ;;  %v841_v21 = vld [vmem:[#allocation2 + $0x8] sm:$0xff] }
 0x325   : > { %631 = vst.msk [vmem:[#allocation2] sm:$0xff] %vm630_vm4, %v619_v9 }
 0x328   : > { %v660_v14 = vpop.permute.xlu0 %659 }
 0x329   : > { %672 = vst.msk [vmem:[#allocation2] sm:$0xff] %vm671_vm5, %v660_v14 }
 0x32c   : > { %v701_v15 = vpop.permute.xlu0 %700 }
 0x32d   : > { %713 = vst.msk [vmem:[#allocation2] sm:$0xff] %vm712_vm6, %v701_v15 }
 0x32e   : > { %v742_v16 = vpop.permute.xlu1 %741 }
 0x32f   : > { %754 = vst.msk [vmem:[#allocation2] sm:$0xff] %vm753_vm7, %v742_v16 }
 0x330   : > { %v584_v17 = vpop.permute.xlu0 %583 }
 0x331   : > { %593 = vst.msk [vmem:[#allocation2 + $0x18] sm:$0xff] %vm589_vm3, %v584_v17 }
 0x333   : > { %v783_v18 = vpop.permute.xlu1 %782 }
 0x334   : > { %795 = vst.msk [vmem:[#allocation2] sm:$0xff] %vm794_vm8, %v783_v18 }
 0x338   : > { %v824_v19 = vpop.permute.xlu1 %823 }
 0x339   : > { %836 = vst.msk [vmem:[#allocation2] sm:$0xff] %vm835_vm9, %v824_v19 }
 0x33d   : > { %v625_v8 = vpop.permute.xlu0 %624 }
 0x33e   : > { %634 = vst.msk [vmem:[#allocation2 + $0x18] sm:$0xff] %vm630_vm4, %v625_v8 }
 0x340   : > { %v840_v11 = vld [vmem:[#allocation2] sm:$0xff] }
 0x341   : > { %1210 = vmatprep.mubr.f32.mxu1 %v840_v11  ;;  %v666_v20 = vpop.permute.xlu0 %665 }
 0x342   : > { %675 = vst.msk [vmem:[#allocation2 + $0x18] sm:$0xff] %vm671_vm5, %v666_v20  ;;  %v707_v22 = vpop.permute.xlu1 %706  ;;  %1211 = vmatmul.mubr.f32.vlgmr.msra.gmra.mrb[0].mxu1 %v841_v21 }
 0x343   : > { %716 = vst.msk [vmem:[#allocation2 + $0x18] sm:$0xff] %vm712_vm6, %v707_v22 }
 0x346   : > { %v748_v23 = vpop.permute.xlu1 %747 }
 0x347   : > { %757 = vst.msk [vmem:[#allocation2 + $0x18] sm:$0xff] %vm753_vm7, %v748_v23 }
 0x34a   : > { %v789_v24 = vpop.permute.xlu1 %788 }
 0x34b   : > { %798 = vst.msk [vmem:[#allocation2 + $0x18] sm:$0xff] %vm794_vm8, %v789_v24 }
 0x34e   : > { %v582_v25 = vpop.permute.xlu1 %581 }
 0x34f   : > { %592 = vst.msk [vmem:[#allocation2 + $0x10] sm:$0xff] %vm589_vm3, %v582_v25 }
 0x352   : > { %v623_v12 = vpop.permute.xlu1 %622 }
 0x353   : > { %633 = vst.msk [vmem:[#allocation2 + $0x10] sm:$0xff] %vm630_vm4, %v623_v12 }
 0x356   : > { %v664_v26 = vpop.permute.xlu1 %663 }
 0x357   : > { %674 = vst.msk [vmem:[#allocation2 + $0x10] sm:$0xff] %vm671_vm5, %v664_v26 }
 0x35a   : > { %v705_v27 = vpop.permute.xlu1 %704 }
 0x35b   : > { %715 = vst.msk [vmem:[#allocation2 + $0x10] sm:$0xff] %vm712_vm6, %v705_v27  ;;  %v746_v28 = vpop.permute.xlu0 %745 }
 0x35c   : > { %756 = vst.msk [vmem:[#allocation2 + $0x10] sm:$0xff] %vm753_vm7, %v746_v28 }
 0x360   : > { %v787_v29 = vpop.permute.xlu0 %786 }
 0x361   : > { %797 = vst.msk [vmem:[#allocation2 + $0x10] sm:$0xff] %vm794_vm8, %v787_v29 }
 0x364   : > { %v828_v30 = vpop.permute.xlu0 %827 }
 0x365   : > { %838 = vst.msk [vmem:[#allocation2 + $0x10] sm:$0xff] %vm835_vm9, %v828_v30  ;;  %v830_v31 = vpop.permute.xlu1 %829 }
 0x366   : > { %839 = vst.msk [vmem:[#allocation2 + $0x18] sm:$0xff] %vm835_vm9, %v830_v31 }
 0x36c   : > { %v842_v32 = vld [vmem:[#allocation2 + $0x10] sm:$0xff] }
 0x36d   : > { %1213 = vmatprep.mubr.f32.mxu1 %v842_v32  ;;  %v843_v33 = vld [vmem:[#allocation2 + $0x18] sm:$0xff] }
 0x36e   : > { %1214 = vmatmul.mubr.f32.gmra.mrb[2].mxu1 %v843_v33 }
 0x415   : > { %v1212_v34 = vpop.f32.mrb[0].mxu1 }
 0x416   : > { %v1026_v35 = vadd.f32 %v1212_v34, %v1637_v50  ;;  %v1020_v36 = vpop.f32.mrb[1].mxu1 }
 0x417   : > { %v1021_v37 = vadd.f32 %v1020_v36, %v1639_v51 }
 0x418   : > { %1041 = vst.msk [vmem:[%s307_s12 + $0x8] sm:$0xff] %vm1039_vm10, %v1026_v35 }
 0x419   : > { %1040 = vst.msk [vmem:[%s307_s12] sm:$0xff] %vm1039_vm10, %v1021_v37 }
 0x441   : > { %v1215_v38 = vpop.f32.mrb[2].mxu1 }
 0x442   : > { %v1036_v39 = vadd.f32 %v1215_v38, %v1645_v54  ;;  %v1030_v40 = vpop.f32.mrb[3].mxu1 }
 0x443   : > { %v1031_v10 = vadd.f32 %v1030_v40, %v1649_v56 }
 0x444   : > { %1043 = vst.msk [vmem:[%s307_s12 + $0x18] sm:$0xff] %vm1039_vm10, %v1036_v39 }
 0x445   : > { %1042 = vst.msk [vmem:[%s307_s12 + $0x10] sm:$0xff] %vm1039_vm10, %v1031_v10 }
 0x446 PF: > { %s18_s27 = sadd.s32 1, %s1336_s27  }
 0x447   : > { %p15_p4 = scmp.ge.s32.totalorder %s18_s27, 4  }
 0x449   :  { %17 = sbr.rel (!%p15_p4) target bundleno = 1 (0x1), region = 82 }

</bundles_post_ra>
